<compile_context>
chip_gen: v5e
topology: v5e:2x2
jax: 0.10.0
libtpu: 0.0.40
codegen_flags: <defaults>
</compile_context>

<pallas_src>
import functools

import jax
import jax.numpy as jnp
from jax import lax
from jax.experimental import pallas as pl
from jax.experimental.pallas import tpu as pltpu

_LANE = 128


def _round_up(a, b):
    return ((a + b - 1) // b) * b


def _sublane_multiple(dtype):
    # native tile sublane count: f32 -> 8, bf16/f16 -> 16, int8/fp8 -> 32
    return max(8, 32 // jnp.dtype(dtype).itemsize)


def _fold_rows(v, tr):
    # (tr, 128) f32 -> (8, 128): sum groups of 8 sublanes.  Layout-preserving
    # reshape (splits the sublane-major dim), reduction is pure VALU adds.
    return v.reshape(tr // 8, 8, _LANE).sum(axis=0)


def _l2_mse_kernel(x_ref, t_ref, sum_ref, *, tr, rows, mask_rows):
    """Plain MSE: accumulate (x - t)^2 partials into the resident (8,128) out."""
    i = pl.program_id(1)

    @pl.when(i == 0)
    def _():
        sum_ref[...] = jnp.zeros_like(sum_ref)

    d = x_ref[...].astype(jnp.float32) - t_ref[...].astype(jnp.float32)
    sq = d * d
    if mask_rows:
        tile_id = pl.program_id(0) * pl.num_programs(1) + i
        row_idx = tile_id * tr + lax.broadcasted_iota(jnp.int32, (tr, _LANE), 0)
        sq = jnp.where(row_idx < rows, sq, 0.0)
    sum_ref[...] += _fold_rows(sq, tr)


def _l2_ignore_kernel(x_ref, t_ref, sum_ref, cnt_ref, *,
                      ignore_value, tr, rows, mask_rows):
    """Masked squared error: accumulate masked (x-t)^2 and the valid count."""
    i = pl.program_id(1)

    @pl.when(i == 0)
    def _():
        sum_ref[...] = jnp.zeros_like(sum_ref)
        cnt_ref[...] = jnp.zeros_like(cnt_ref)

    t_raw = t_ref[...]
    keep = t_raw != jnp.asarray(ignore_value, dtype=t_raw.dtype)
    if mask_rows:
        tile_id = pl.program_id(0) * pl.num_programs(1) + i
        row_idx = tile_id * tr + lax.broadcasted_iota(jnp.int32, (tr, _LANE), 0)
        keep = jnp.logical_and(keep, row_idx < rows)
    d = x_ref[...].astype(jnp.float32) - t_raw.astype(jnp.float32)
    sq = jnp.where(keep, d * d, 0.0)
    sum_ref[...] += _fold_rows(sq, tr)
    cnt_ref[...] += _fold_rows(keep.astype(jnp.float32), tr)


def l2_loss_with_ignore(x, target, ignore_value=None,
                        block_bytes=2 * 1024 * 1024):
    """Pallas equivalent of L2LossWithIgnore.forward(input, target).

    Returns NaN (0/0) if ignore_value is set and no element is selected,
    matching torch's mean over an empty selection.
    """
    if x.shape != target.shape:
        # TODO(synk): express genuine scalar / per-channel broadcasts via the
        # target BlockSpec index_map instead of materializing a full copy.
        target = jnp.broadcast_to(target, x.shape)

    n = int(x.size)
    if n == 0:
        return jnp.float32(jnp.nan)

    xf = jnp.ravel(x)       # free reshape, native dtype (no wrapper upcast)
    tf = jnp.ravel(target)

    rows = n // _LANE       # whole 128-lane rows handled by the kernel
    n_main = rows * _LANE

    sum_main = jnp.float32(0.0)
    cnt_main = jnp.float32(0.0)

    if rows > 0:
        if n_main != n:
            # Rare unaligned case (n % 128 != 0): slice the aligned prefix
            # (copy), tiny tail handled with plain jnp below.
            x_main = lax.slice(xf, (0,), (n_main,))
            t_main = lax.slice(tf, (0,), (n_main,))
        else:
            x_main, t_main = xf, tf
        x2d = x_main.reshape(rows, _LANE)   # free reshape
        t2d = t_main.reshape(rows, _LANE)

        # Tile rows scaled by dtype: ~block_bytes of DMA per stream per step.
        sub = max(_sublane_multiple(x.dtype), _sublane_multiple(target.dtype))
        max_item = max(jnp.dtype(x.dtype).itemsize,
                       jnp.dtype(target.dtype).itemsize)
        tr = (block_bytes // (_LANE * max_item)) // sub * sub
        # Let the 2-way (v7x megacore) split engage even for smaller inputs.
        tr = min(max(tr, sub), _round_up(pl.cdiv(rows, 2), sub))
        tr = max(tr, sub)

        n_tiles = pl.cdiv(rows, tr)
        inner = pl.cdiv(n_tiles, 2)             # grid = (2, inner)
        # Mask needed iff the grid covers more rows than exist (partial last
        # block or odd tile count -> one duplicated, fully-masked tile).
        mask_rows = (2 * inner * tr != rows)

        def in_map(p, i):
            # Clamp so every step maps inside the array; logically-OOB rows
            # are zero-masked in-kernel using the static `rows`.
            return (jnp.minimum(p * inner + i, n_tiles - 1), 0)

        in_spec = pl.BlockSpec((tr, _LANE), in_map)
        out_spec = pl.BlockSpec((8, _LANE), lambda p, i: (p, 0))
        out_sds = jax.ShapeDtypeStruct((2 * 8, _LANE), jnp.float32)
        cparams = pltpu.CompilerParams(
            dimension_semantics=("parallel", "arbitrary"),
            vmem_limit_bytes=32 * 1024 * 1024,
        )

        if ignore_value is not None:
            kernel = functools.partial(
                _l2_ignore_kernel, ignore_value=ignore_value,
                tr=tr, rows=rows, mask_rows=mask_rows)
            sum_out, cnt_out = pl.pallas_call(
                kernel,
                out_shape=(out_sds, out_sds),
                grid_spec=pltpu.PrefetchScalarGridSpec(
                    num_scalar_prefetch=0,
                    grid=(2, inner),
                    in_specs=[in_spec, in_spec],
                    out_specs=[out_spec, out_spec],
                ),
                compiler_params=cparams,
            )(x2d, t2d)
            sum_main = jnp.sum(sum_out)
            cnt_main = jnp.sum(cnt_out)
        else:
            kernel = functools.partial(
                _l2_mse_kernel, tr=tr, rows=rows, mask_rows=mask_rows)
            sum_out = pl.pallas_call(
                kernel,
                out_shape=out_sds,
                grid_spec=pltpu.PrefetchScalarGridSpec(
                    num_scalar_prefetch=0,
                    grid=(2, inner),
                    in_specs=[in_spec, in_spec],
                    out_specs=out_spec,
                ),
                compiler_params=cparams,
            )(x2d, t2d)
            sum_main = jnp.sum(sum_out)

    # ---- ragged tail (< 128 elements), plain jnp ----
    sum_tail = jnp.float32(0.0)
    cnt_tail = jnp.float32(0.0)
    if n_main != n:
        x_tail = lax.slice(xf, (n_main,), (n,)).astype(jnp.float32)
        t_tail_raw = lax.slice(tf, (n_main,), (n,))
        d_tail = x_tail - t_tail_raw.astype(jnp.float32)
        if ignore_value is not None:
            keep_t = t_tail_raw != jnp.asarray(ignore_value, t_tail_raw.dtype)
            sum_tail = jnp.sum(jnp.where(keep_t, d_tail * d_tail, 0.0))
            cnt_tail = jnp.sum(keep_t.astype(jnp.float32))
        else:
            sum_tail = jnp.sum(d_tail * d_tail)

    if ignore_value is not None:
        return (sum_main + sum_tail) / (cnt_main + cnt_tail)
    return (sum_main + sum_tail) / jnp.float32(n)


def _reference(x, target, ignore_value=None):
    xf = x.astype(jnp.float32)
    tf = target.astype(jnp.float32)
    if ignore_value is not None:
        mask = (target != jnp.asarray(ignore_value, target.dtype)
                ).astype(jnp.float32)
        return jnp.sum(jnp.square(xf - tf) * mask) / jnp.sum(mask)
    return jnp.mean(jnp.square(xf - tf))


if __name__ == "__main__":
    key = jax.random.PRNGKey(0)
    k1, k2, k3, k4, k5, k6 = jax.random.split(key, 6)

    IGNORE = -100.0

    # case 1/2: NCHW-shaped tensors (n % 128 == 0 -> fully copy-free path)
    shape = (2, 4, 16, 16)
    x = jax.random.normal(k1, shape, dtype=jnp.float32)
    target = jax.random.normal(k2, shape, dtype=jnp.float32)
    ignore_mask = jax.random.bernoulli(k3, 0.3, shape)
    target = jnp.where(ignore_mask, jnp.float32(IGNORE), target)

    loss_ign = l2_loss_with_ignore(x, target, ignore_value=IGNORE)
    ref_ign = _reference(x, target, ignore_value=IGNORE)

    loss_plain = l2_loss_with_ignore(x, target, ignore_value=None)
    ref_plain = _reference(x, target, ignore_value=None)

    # case 3: native bf16 inputs (kernel reads half the HBM bytes, upcasts in VMEM)
    x16 = x.astype(jnp.bfloat16)
    t16 = target.astype(jnp.bfloat16)
    loss_bf16 = l2_loss_with_ignore(x16, t16, ignore_value=IGNORE)
    ref_bf16 = _reference(x16, t16, ignore_value=IGNORE)

    # case 4: unaligned size (n % 128 != 0) -> partial-block masking + jnp tail
    shape_u = (2, 9, 65)   # n = 1170
    xu = jax.random.normal(k4, shape_u, dtype=jnp.float32)
    tu = jax.random.normal(k5, shape_u, dtype=jnp.float32)
    mu = jax.random.bernoulli(k6, 0.25, shape_u)
    tu = jnp.where(mu, jnp.float32(IGNORE), tu)
    loss_u = l2_loss_with_ignore(xu, tu, ignore_value=IGNORE)
    ref_u = _reference(xu, tu, ignore_value=IGNORE)

    jax.block_until_ready((loss_ign, loss_plain, loss_bf16, loss_u))

    assert jnp.allclose(loss_ign, ref_ign, rtol=1e-5, atol=1e-5), (
        loss_ign, ref_ign)
    assert jnp.allclose(loss_plain, ref_plain, rtol=1e-5, atol=1e-5), (
        loss_plain, ref_plain)
    assert jnp.allclose(loss_bf16, ref_bf16, rtol=1e-3, atol=1e-3), (
        loss_bf16, ref_bf16)
    assert jnp.allclose(loss_u, ref_u, rtol=1e-5, atol=1e-5), (
        loss_u, ref_u)

    print("KERNEL_OK")
</pallas_src>

<mosaic_0001>
module attributes {stable_mosaic.version = 11 : i64} {
  func.func @_l2_ignore_kernel(%arg0: i32, %arg1: i32, %arg2: memref<8x128xf32, #tpu.memory_space<vmem>>, %arg3: memref<8x128xf32, #tpu.memory_space<vmem>>, %arg4: memref<8x128xf32, #tpu.memory_space<vmem>>, %arg5: memref<8x128xf32, #tpu.memory_space<vmem>>) attributes {dimension_semantics = [#tpu.dimension_semantics<parallel>, #tpu.dimension_semantics<arbitrary>], iteration_bounds = array<i64: 2, 1>, scalar_prefetch = 0 : i64, scratch_operands = 0 : i64, tpu.core_type = #tpu.core_type<tc>, window_params = [{transform_indices = @transform_0, window_bounds = array<i64: 8, 128>}, {transform_indices = @transform_1, window_bounds = array<i64: 8, 128>}, {transform_indices = @transform_2, window_bounds = array<i64: 8, 128>}, {transform_indices = @transform_3, window_bounds = array<i64: 8, 128>}]} {
    %c0_i32 = arith.constant 0 : i32
    %0 = arith.cmpi eq, %arg1, %c0_i32 : i32
    %1 = arith.extui %0 : i1 to i32
    %c0_i32_0 = arith.constant 0 : i32
    %2 = arith.cmpi ne, %1, %c0_i32_0 : i32
    scf.if %2 {
      %cst_15 = arith.constant 0.000000e+00 : f32
      %23 = vector.broadcast %cst_15 : f32 to vector<8x128xf32>
      %c0_16 = arith.constant 0 : index
      %c0_17 = arith.constant 0 : index
      %24 = vector.load %arg4[%c0_16, %c0_17] : memref<8x128xf32, #tpu.memory_space<vmem>>, vector<8x128xf32>
      tpu.vector_store %arg4[%c0_16, %c0_17], %23 {strides = array<i32>} : memref<8x128xf32, #tpu.memory_space<vmem>>, vector<8x128xf32>,
      %cst_18 = arith.constant 0.000000e+00 : f32
      %25 = vector.broadcast %cst_18 : f32 to vector<8x128xf32>
      %c0_19 = arith.constant 0 : index
      %c0_20 = arith.constant 0 : index
      %26 = vector.load %arg5[%c0_19, %c0_20] : memref<8x128xf32, #tpu.memory_space<vmem>>, vector<8x128xf32>
      tpu.vector_store %arg5[%c0_19, %c0_20], %25 {strides = array<i32>} : memref<8x128xf32, #tpu.memory_space<vmem>>, vector<8x128xf32>,
    } else {
    }
    %c0 = arith.constant 0 : index
    %c0_1 = arith.constant 0 : index
    %3 = vector.load %arg3[%c0, %c0_1] : memref<8x128xf32, #tpu.memory_space<vmem>>, vector<8x128xf32>
    %cst = arith.constant -1.000000e+02 : f32
    %4 = vector.broadcast %cst : f32 to vector<8x128xf32>
    %5 = arith.cmpf one, %3, %4 : vector<8x128xf32>
    %c0_2 = arith.constant 0 : index
    %c0_3 = arith.constant 0 : index
    %6 = vector.load %arg2[%c0_2, %c0_3] : memref<8x128xf32, #tpu.memory_space<vmem>>, vector<8x128xf32>
    %7 = arith.subf %6, %3 : vector<8x128xf32>
    %8 = arith.mulf %7, %7 : vector<8x128xf32>
    %cst_4 = arith.constant 0.000000e+00 : f32
    %9 = vector.broadcast %cst_4 : f32 to vector<8x128xf32>
    %10 = arith.select %5, %8, %9 : vector<8x128xi1>, vector<8x128xf32>
    %c0_5 = arith.constant 0 : index
    %c0_6 = arith.constant 0 : index
    %11 = vector.load %arg4[%c0_5, %c0_6] : memref<8x128xf32, #tpu.memory_space<vmem>>, vector<8x128xf32>
    %12 = vector.shape_cast %10 : vector<8x128xf32> to vector<1x8x128xf32>
    %cst_7 = arith.constant dense<0.000000e+00> : vector<8x128xf32>
    %13 = vector.multi_reduction <add>, %12, %cst_7 [0] : vector<1x8x128xf32> to vector<8x128xf32>
    %14 = arith.addf %11, %13 : vector<8x128xf32>
    %c0_8 = arith.constant 0 : index
    %c0_9 = arith.constant 0 : index
    %15 = vector.load %arg4[%c0_8, %c0_9] : memref<8x128xf32, #tpu.memory_space<vmem>>, vector<8x128xf32>
    tpu.vector_store %arg4[%c0_8, %c0_9], %14 {strides = array<i32>} : memref<8x128xf32, #tpu.memory_space<vmem>>, vector<8x128xf32>,
    %c0_10 = arith.constant 0 : index
    %c0_11 = arith.constant 0 : index
    %16 = vector.load %arg5[%c0_10, %c0_11] : memref<8x128xf32, #tpu.memory_space<vmem>>, vector<8x128xf32>
    %17 = arith.extui %5 : vector<8x128xi1> to vector<8x128xi32>
    %18 = arith.sitofp %17 : vector<8x128xi32> to vector<8x128xf32>
    %19 = vector.shape_cast %18 : vector<8x128xf32> to vector<1x8x128xf32>
    %cst_12 = arith.constant dense<0.000000e+00> : vector<8x128xf32>
    %20 = vector.multi_reduction <add>, %19, %cst_12 [0] : vector<1x8x128xf32> to vector<8x128xf32>
    %21 = arith.addf %16, %20 : vector<8x128xf32>
    %c0_13 = arith.constant 0 : index
    %c0_14 = arith.constant 0 : index
    %22 = vector.load %arg5[%c0_13, %c0_14] : memref<8x128xf32, #tpu.memory_space<vmem>>, vector<8x128xf32>
    tpu.vector_store %arg5[%c0_13, %c0_14], %21 {strides = array<i32>} : memref<8x128xf32, #tpu.memory_space<vmem>>, vector<8x128xf32>,
    return
  }
  func.func @transform_0(%arg0: i32, %arg1: i32) -> (i32, i32) {
    %c1_i32 = arith.constant 1 : i32
    %0 = arith.muli %arg0, %c1_i32 : i32
    %1 = arith.addi %0, %arg1 : i32
    %c1_i32_0 = arith.constant 1 : i32
    %2 = arith.minsi %1, %c1_i32_0 : i32
    %c0_i32 = arith.constant 0 : i32
    %c0_i32_1 = arith.constant 0 : i32
    return %2, %c0_i32 : i32, i32
  }
  func.func @transform_1(%arg0: i32, %arg1: i32) -> (i32, i32) {
    %c1_i32 = arith.constant 1 : i32
    %0 = arith.muli %arg0, %c1_i32 : i32
    %1 = arith.addi %0, %arg1 : i32
    %c1_i32_0 = arith.constant 1 : i32
    %2 = arith.minsi %1, %c1_i32_0 : i32
    %c0_i32 = arith.constant 0 : i32
    %c0_i32_1 = arith.constant 0 : i32
    return %2, %c0_i32 : i32, i32
  }
  func.func @transform_2(%arg0: i32, %arg1: i32) -> (i32, i32) {
    %c0_i32 = arith.constant 0 : i32
    %c0_i32_0 = arith.constant 0 : i32
    return %arg0, %c0_i32 : i32, i32
  }
  func.func @transform_3(%arg0: i32, %arg1: i32) -> (i32, i32) {
    %c0_i32 = arith.constant 0 : i32
    %c0_i32_0 = arith.constant 0 : i32
    return %arg0, %c0_i32 : i32, i32
  }
}

</mosaic_0001>

<bundles_post_ra>
// kernel: tpu_custom_call.1
= control target key start
LH: loop header
LB: loop body
LE: loop exit
PB: predicated region body
PF: predicated region fallthrough
CT: control target
= control target key end

     0   :  { %s991_s0 = inlined_call_operand.hbm [shape: f32[16,128], index: 0, kind: input, shape index: {}]   ;;  %s992_s1 = inlined_call_operand.hbm [shape: f32[16,128], index: 1, kind: input, shape index: {}]   ;;  %s993_s2 = inlined_call_operand.hbm [shape: f32[16,128], index: 2, kind: output, shape index: {0}]   ;;  %s994_s3 = inlined_call_operand.hbm [shape: f32[16,128], index: 3, kind: output, shape index: {1}]  }
   0x1   :  { %997 = sst [smem:[#allocation17_spill]] %s991_s0 }
   0x2   :  { %9 = vsyncpa [#allocation3], 0 }
   0x3   :  { %11 = vsyncpa [#allocation3 + $0x1], 0 }
   0x4   :  { %12 = vsyncpa [#allocation6], 0 }
   0x5   :  { %14 = vsyncpa [#allocation6 + $0x1], 0 }
   0x6   :  { %15 = vsyncpa [#allocation4], 0 }
   0x7   :  { %17 = vsyncpa [#allocation4 + $0x1], 0 }
   0x8   :  { %18 = vsyncpa [#allocation9], 0 }
   0x9   :  { %20 = vsyncpa [#allocation9 + $0x1], 0  ;;  %s807_s12 = smov 0   ;;  %s809_s13 = smov 0  }
   0xa   :  { %s811_s14 = smov 0   ;;  %s813_s15 = smov 0  }
   0xb   :  { %s815_s16 = smov 0   ;;  %s817_s17 = smov 0  }
   0xc   :  { %s819_s18 = smov 0   ;;  %s821_s19 = smov 0  }
   0xd   :  { %s823_s20 = smov 0  }
   0xe LB: > { %998 = sst [smem:[#allocation14_spill]] %s780_s19  ;;  %s465_s21 = sadd.s32 4294967295, %s784_s20   ;;  %s784_s20 = sphi %s823_s20, %s26_s20   ;;  %s780_s19 = sphi %s821_s19, %s1008_s19   ;;  %s776_s18 = sphi %s819_s18, %s1007_s18   ;;  %s772_s17 = sphi %s817_s17, %s1014_s17   ;;  %s768_s16 = sphi %s815_s16, %s1013_s16   ;;  %s764_s15 = sphi %s813_s15, %s1012_s15   ;;  %s760_s14 = sphi %s811_s14, %s1011_s14   ;;  %s756_s13 = sphi %s809_s13, %s1010_s13   ;;  %s752_s12 = sphi %s807_s12, %s1009_s12  }
   0xf   : > { %s466_s22 = sadd.s32 4294967294, %s784_s20   ;;  %s38_s23 = sadd.s32 1, %s780_s19 }
  0x10   : > { %p43_p0 = scmp.lt.s32.totalorder %s780_s19, 1  ;;  %p40_p1 = scmp.ge.s32.totalorder %s38_s23, 2 }
  0x11   : > { %s51_s24 = sadd.s32 1, %s772_s17  ;;  %p58_p2 = scmp.ne.s32.totalorder %s772_s17, %s768_s16 }
  0x12   : > { %s856_s25 = scalar_select %p43_p0, %s780_s19, 1 }
  0x13   : > { %s1016_s23 = smov (%p40_p1, %s38_s23), 0  ;;  %p59_p3 = scmp.eq.s32.totalorder %s784_s20, 0 }
  0x14   : > { %999 = sst [smem:[#allocation15_spill]] %s1016_s23  ;;  %p46_p4 = scmp.lt.s32.totalorder %s1016_s23, 1 }
  0x15   : > { %p64_p5 = scmp.ne.s32.totalorder %s768_s16, %s764_s15  ;;  %p865_p6 = por %p59_p3, %p58_p2 }
  0x16   : > { %p65_p7 = scmp.eq.s32.totalorder %s465_s21, 0  ;;  %s106_s29 = ssub.s32 %s780_s19, %s1016_s23 }
  0x17   : > { %s47_s27 = scalar_select %p46_p4, %s1016_s23, 1 }
  0x18   : > { %p870_p8 = por %p65_p7, %p64_p5  ;;  %p107_p9 = scmp.eq.s32.totalorder %s106_s29, 0 }
  0x19   : > { %s48_s30 = ssub.s32 %s856_s25, %s47_s27  ;;  %s109_s4 = sadd.s32 1, %s760_s14 }
  0x1a   : > { %p49_p10 = scmp.eq.s32.totalorder %s48_s30, 0  ;;  %p119_p11 = scmp.ne.s32.totalorder %s760_s14, %s756_s13 }
  0x1b   : > { %s879_s5 = scalar_select %p107_p9, %s760_s14, %s109_s4  }
  0x1c   : > { %s882_s6 = scalar_select %p49_p10, %s772_s17, %s51_s24  }
  0x1d   : > { %p120_p12 = scmp.eq.s32.totalorder %s465_s21, 1  ;;  %p125_p13 = scmp.ne.s32.totalorder %s756_s13, %s752_s12 }
  0x1e   : > { %1002 = sst [smem:[#allocation16_spill]] %s882_s6  ;;  %p126_p0 = scmp.eq.s32.totalorder %s466_s22, 1 }
  0x1f   : > { %p888_p1 = por %p120_p12, %p119_p11  ;;  %p468_p2 = scmp.ge.s32.totalorder %s784_s20, 2 }
  0x20   : > { %p893_p3 = por %p126_p0, %p125_p13  ;;  %p507_p4 = scmp.lt.s32.totalorder %s784_s20, 2 }
  0x21   : > { %s172_s9 = sand.u32 1, %s772_s17   ;;  %s470_s10 = sshll.u32 %s856_s25, 3 }
  0x22   : > { %s469_s11 = sshll.u32 %s172_s9, 3  ;;  %s1005_s0 = sld [smem:[#allocation17_spill]] }
  0x23   : > { %s176_s22 = scalar_lea.vmem [#allocation2], %s469_s11  ;;  %p494_p5 = pnand %p507_p4, %p865_p6 }
  0x24   : > { %s187_s29 = sshll.u32 %s176_s22, 4  ;;  %p473_p7 = scmp.ge.s32.totalorder %s784_s20, 1  ;;  %s188_s29 = int_to_ptr.vmem [resolvable:$true] %s187_s29 }
  0x25   : > { %p214_p9 = scmp.lt.s32.totalorder %s784_s20, 3  ;;  %s173_s30 = scalar_lea.sflag [#allocation3], %s172_s9 }
  0x26   : > { %s205_s25 = scalar_lea.hbm %s992_s1, %s470_s10  ;;  %s198_s6 = scalar_lea.vmem [#allocation5], %s469_s11 }
  0x27   : > { %p215_p10 = pnand %p473_p7, %p214_p9  ;;  %s207_s19 = sshll.u32 %s205_s25, 4  ;;  %s208_s19 = int_to_ptr.hbm [resolvable:$true] %s207_s19 }
  0x28   : > { %s183_s24 = scalar_lea.hbm %s1005_s0, %s470_s10  ;;  %s209_s15 = sshll.u32 %s198_s6, 4  ;;  %s210_s15 = int_to_ptr.vmem [resolvable:$true] %s209_s15 }
  0x29   : > { %s185_s27 = sshll.u32 %s183_s24, 4  ;;  %s195_s21 = scalar_lea.sflag [#allocation6], %s172_s9  ;;  %s186_s27 = int_to_ptr.hbm [resolvable:$true] %s185_s27 }
  0x2a   : > { %496 = dma.hbm_to_vmem [thread:$0]  (!%p494_p5), %s186_s27, 128, %s188_s29, %s173_s30  }
  0x2b   : > { %499 = dma.hbm_to_vmem [thread:$0]  (!%p494_p5), %s208_s19, 128, %s210_s15, %s195_s21  }
  0x2c   : > { %218 = sbr.rel (%p215_p10) target bundleno = 82 (0x52), region = 28  ;;  %s220_s26 = sand.u32 (!%p215_p10), 1, %s768_s16  }
  0x2d   : > { %s474_s24 = sshll.u32 (!%p215_p10), %s220_s26, 3  ;;  %s221_s22 = scalar_lea.sflag (!%p215_p10), [#allocation3], %s220_s26 }
  0x2e   : > { %s224_s0 = scalar_lea.vmem (!%p215_p10), [#allocation2], %s474_s24 }
  0x31   : > { %735 = dma.done.wait (%p870_p8), %s221_s22, 128  }
  0x32   : > { %737 = vsyncadd (%p870_p8), %s221_s22, 4294967168  ;;  %s231_s23 = scalar_lea.sflag [#allocation6], %s220_s26  ;;  %s234_s10 = scalar_lea.vmem [#allocation5], %s474_s24 }
  0x33   : > { %739 = dma.done.wait (%p870_p8), %s231_s23, 128  }
  0x34   : > { %741 = vsyncadd (%p870_p8), %s231_s23, 4294967168  ;;  %s920_s19 = sand.u32 1, %s756_s13   ;;  %s481_s9 = sshll.u32 %s776_s18, 3  ;;  %v280_v0 = vld [vmem:[%s234_s10] sm:$0xff]  ;;  %v282_v1 = vld [vmem:[%s224_s0] sm:$0xff]  ;;  %v786_v3 = vmov 0.0  }
  0x35   : > { %s476_s6 = sshll.u32 %s920_s19, 3  ;;  %s312_s29 = scalar_lea.hbm %s993_s2, %s481_s9  ;;  %vm281_vm0 = vcmp.ne.f32.partialorder %v280_v0, -100.0  ;;  %v283_v2 = vsub.f32 %v282_v1, %v280_v0 }
  0x36   : > { %s326_s25 = scalar_lea.hbm %s994_s3, %s481_s9  ;;  %s267_s15 = scalar_lea.vmem [#allocation8], %s476_s6  ;;  %v478_v4 = vsel %vm281_vm0, 1.0, %v786_v3 }
  0x37   : > { %s328_s28 = sshll.u32 %s267_s15, 4  ;;  %s330_s21 = sshll.u32 %s326_s25, 4  ;;  %v284_v5 = vmul.f32 %v283_v2, %v283_v2  ;;  %295 = vst [vmem:[%s267_s15] sm:$0xff] %v478_v4  ;;  %s329_s28 = int_to_ptr.vmem [resolvable:$true] %s328_s28  ;;  %s331_s21 = int_to_ptr.hbm [resolvable:$true] %s330_s21 }
  0x38   : > { %s260_s26 = scalar_lea.vmem [#allocation7], %s476_s6  ;;  %s316_s18 = sshll.u32 %s312_s29, 4  ;;  %s932_s18 = int_to_ptr.hbm [resolvable:$true] %s316_s18 }
  0x39   : > { %s314_s24 = sshll.u32 %s260_s26, 4  ;;  %v285_v6 = vsel %vm281_vm0, %v284_v5, 0.0  ;;  %s302_s0 = scalar_lea.sflag [#allocation9], %s920_s19  ;;  %s930_s24 = int_to_ptr.vmem [resolvable:$true] %s314_s24 }
  0x3a   : > { %s656_s22 = sshra.s32 %s331_s21, 4  ;;  %s662_s9 = scalar_lea.hbm %s994_s3, 16  ;;  %s657_s22 = int_to_ptr.hbm [resolvable:$true] %s656_s22 }
  0x3b   : > { %s658_s23 = scalar_lea.hbm %s657_s22, 8  ;;  %p663_p12 = scmp.lt.s32.totalorder %s657_s22, %s994_s3 }
  0x3c   : > { %p659_p6 = scmp.ne.s32.totalorder %s657_s22, %s658_s23  ;;  %p664_p13 = scmp.lt.s32.totalorder %s662_s9, %s658_s23 }
  0x3e   : > { %p660_p8 = pnand %p659_p6, %p888_p1  ;;  %p665_p0 = por %p664_p13, %p663_p12 }
  0x40   : > { %p661_p11 = pneg %p660_p8 }
  0x42   : > { %p666_p4 = pnand %p665_p0, %p661_p11 }
  0x44   : > { %669 = shalt.err (!%p666_p4)
}
  0x45   : > { %490 = dma.vmem_to_hbm [thread:$0]  (%p888_p1), %s329_s28, 128, %s331_s21, %s302_s0   ;;  %289 = vst [vmem:[%s260_s26] sm:$0xff] %v285_v6 }
  0x46   : > { %s297_s29 = scalar_lea.sflag [#allocation4], %s920_s19  ;;  %s684_s30 = sshra.s32 %s932_s18, 4  ;;  %s685_s30 = int_to_ptr.hbm [resolvable:$true] %s684_s30 }
  0x47   : > { %s686_s4 = scalar_lea.hbm %s685_s30, 8  ;;  %s690_s22 = scalar_lea.hbm %s993_s2, 16 }
  0x48   : > { %p687_p5 = scmp.ne.s32.totalorder %s685_s30, %s686_s4  ;;  %p691_p10 = scmp.lt.s32.totalorder %s685_s30, %s993_s2 }
  0x49   : > { %p692_p6 = scmp.lt.s32.totalorder %s690_s22, %s686_s4 }
  0x4a   : > { %p688_p7 = pnand %p687_p5, %p888_p1 }
  0x4b   : > { %p693_p8 = por %p692_p6, %p691_p10 }
  0x4c   : > { %p689_p9 = pneg %p688_p7 }
  0x4e   : > { %p694_p11 = pnand %p693_p8, %p689_p9 }
  0x50   : > { %697 = shalt.err (!%p694_p11)
}
  0x51   : > { %489 = dma.vmem_to_hbm [thread:$0]  (%p888_p1), %s930_s24, 128, %s932_s18, %s297_s29  }
  0x52 PF: > { %s342_s19 = sand.u32 1, %s752_s12   ;;  %p501_p12 = pnand %p468_p2, %p893_p3 }
  0x53   : > { %s343_s28 = scalar_lea.sflag [#allocation4], %s342_s19 }
  0x54   : > { %p502_p13 = pneg %p501_p12 }
  0x56   : > { %743 = dma.done.wait (%p502_p13), %s343_s28, 128  }
  0x57   : > { %745 = vsyncadd (%p502_p13), %s343_s28, 4294967168  ;;  %s353_s21 = scalar_lea.sflag [#allocation9], %s342_s19 }
  0x58   : > { %747 = dma.done.wait (%p502_p13), %s353_s21, 128  }
  0x59   : > { %749 = vsyncadd (%p502_p13), %s353_s21, 4294967168  ;;  %s26_s20 = sadd.s32 1, %s784_s20   ;;  %s1006_s7 = sld [smem:[#allocation16_spill]] }
  0x5a   : > { %p23_p0 = scmp.ge.s32.totalorder %s26_s20, 4   ;;  %s1007_s18 = sld [smem:[#allocation14_spill]] }
  0x5b   : > { %s1008_s19 = sld [smem:[#allocation15_spill]]  ;;  %s1009_s12 = smov %s756_s13 }
  0x5c   : > { %s1010_s13 = smov %s760_s14  ;;  %s1011_s14 = smov %s879_s5 }
  0x5d   : > { %s1012_s15 = smov %s768_s16  ;;  %s1013_s16 = smov %s772_s17 }
  0x5e   :  { %25 = sbr.rel (!%p23_p0) target bundleno = 14 (0xe), region = 107 }
  0x5f   : > { %s1014_s17 = smov %s1006_s7 }
  0x63   :  { %359 = vsyncpa [#allocation3], 1 }
  0x64   :  { %361 = vsyncpa [#allocation3 + $0x1], 1 }
  0x65   :  { %362 = vsyncpa [#allocation6], 1 }
  0x66   :  { %364 = vsyncpa [#allocation6 + $0x1], 1 }
  0x67   :  { %365 = vsyncpa [#allocation4], 1 }
  0x68   :  { %367 = vsyncpa [#allocation4 + $0x1], 1 }
  0x69   :  { %368 = vsyncpa [#allocation9], 1 }
  0x6a   :  { %370 = vsyncpa [#allocation9 + $0x1], 1 }

</bundles_post_ra>
